<compile_context>
chip_gen: v7x
topology: tpu7x:2x2x1
jax: 0.10.0
libtpu: 0.0.40
codegen_flags: <defaults>
</compile_context>

<pallas_src>
import functools

import jax
import jax.numpy as jnp
from jax import lax
from jax.experimental import pallas as pl
from jax.experimental.pallas import tpu as pltpu


def residual_stack_kernel(x_ref, w1_ref, w2_ref, o_ref, *, num_layers, nb, seq_len):
    # x_ref:  (nb, L, C)              nb batch elements folded into one block
    # w1_ref: (num_layers, 3, C, H)   k=3 conv weights, tap-major, bf16
    # w2_ref: (num_layers, H, C)      k=1 conv weights, bf16
    _, L, C = x_ref.shape
    M = nb * seq_len

    # Residual carry stays f32 (v5e VPU has no bf16); flatten batch into M.
    x = x_ref[...].astype(jnp.float32).reshape(M, C)

    # Per-row position within its own sequence; used to zero the rolled rows
    # that would otherwise wrap across sequence/batch boundaries (zero pad).
    pos = lax.broadcasted_iota(jnp.int32, (M, C), 0) % seq_len
    is_first = pos == 0               # r_prev must be zero here (l == 0)
    is_last = pos == seq_len - 1      # r_next must be zero here (l == L-1)

    for layer in range(num_layers):   # static unroll; num_layers is small
        r = jnp.maximum(x, 0.0)       # ReLU(x), f32

        # Shifted copies via XLU roll + boundary masking (padding=1 conv).
        r_prev = jnp.where(is_first, 0.0, pltpu.roll(r, shift=1, axis=0))
        r_next = jnp.where(is_last, 0.0, pltpu.roll(r, shift=M - 1, axis=0))

        # Cast only at the MXU boundary; accumulate in f32.
        r_b = r.astype(jnp.bfloat16)
        rp_b = r_prev.astype(jnp.bfloat16)
        rn_b = r_next.astype(jnp.bfloat16)

        h = (jnp.dot(rp_b, w1_ref[layer, 0], preferred_element_type=jnp.float32)
             + jnp.dot(r_b, w1_ref[layer, 1], preferred_element_type=jnp.float32)
             + jnp.dot(rn_b, w1_ref[layer, 2], preferred_element_type=jnp.float32))
        h = jnp.maximum(h, 0.0)       # ReLU, f32

        y = jnp.dot(h.astype(jnp.bfloat16), w2_ref[layer],
                    preferred_element_type=jnp.float32)
        x = x + y                     # residual add, f32

    o_ref[...] = jnp.maximum(x, 0.0).reshape(nb, seq_len, C).astype(o_ref.dtype)


def _choose_batch_fold(n, seq_len, target_m=512):
    """Largest divisor nb of n with nb*L near target_m (fill the MXU M dim),
    while keeping the parallel grid length >= 2 (two TensorCores on v7x)."""
    nb = 1
    for d in range(1, n + 1):
        if n % d != 0:
            continue
        if d * seq_len > max(seq_len, target_m):
            continue
        if n >= 2 and n // d < 2:
            continue
        nb = d
    return nb


def residual_stack_pallas(x_ncl, w1_all, w2_all):
    """x_ncl: (N, C, L) float32 (PyTorch layout). Returns (N, C, L)."""
    num_layers, _, C, H = w1_all.shape
    N, _, L = x_ncl.shape

    nb = _choose_batch_fold(N, L)
    grid_n = N // nb

    # NCL -> NLC so channels sit on the lane axis and convs are MXU matmuls.
    x_nlc = jnp.transpose(x_ncl, (0, 2, 1))
    # Feed the MXU in bf16 (halves weight DMA / VMEM); accumulation is f32.
    w1_b = w1_all.astype(jnp.bfloat16)
    w2_b = w2_all.astype(jnp.bfloat16)

    kernel = functools.partial(residual_stack_kernel,
                               num_layers=num_layers, nb=nb, seq_len=L)
    out_nlc = pl.pallas_call(
        kernel,
        out_shape=jax.ShapeDtypeStruct((N, L, C), x_nlc.dtype),
        grid=(grid_n,),
        in_specs=[
            pl.BlockSpec((nb, L, C), lambda n: (n, 0, 0)),                # activations
            pl.BlockSpec((num_layers, 3, C, H), lambda n: (0, 0, 0, 0)),  # k=3 weights
            pl.BlockSpec((num_layers, H, C), lambda n: (0, 0, 0)),        # k=1 weights
        ],
        out_specs=pl.BlockSpec((nb, L, C), lambda n: (n, 0, 0)),
        compiler_params=pltpu.CompilerParams(
            dimension_semantics=("parallel",)),
    )(x_nlc, w1_b, w2_b)

    return jnp.transpose(out_nlc, (0, 2, 1))    # back to (N, C, L)


def residual_stack_reference(x_ncl, w1_all, w2_all):
    """Pure-JAX f32 reference using lax.conv, matching PyTorch Conv1d semantics."""
    num_layers = w1_all.shape[0]
    x = x_ncl
    for layer in range(num_layers):
        r = jnp.maximum(x, 0.0)
        # our w1_all[layer] is (3, C_in, H); PyTorch weight is (H, C_in, 3)
        w1_t = jnp.transpose(w1_all[layer], (2, 1, 0))            # (H, C, 3)
        h = lax.conv_general_dilated(
            r, w1_t, window_strides=(1,), padding=((1, 1),),
            dimension_numbers=("NCH", "OIH", "NCH"))
        h = jnp.maximum(h, 0.0)
        # our w2_all[layer] is (H, C_out); PyTorch weight is (C_out, H, 1)
        w2_t = jnp.transpose(w2_all[layer], (1, 0))[:, :, None]    # (C, H, 1)
        y = lax.conv_general_dilated(
            h, w2_t, window_strides=(1,), padding=((0, 0),),
            dimension_numbers=("NCH", "OIH", "NCH"))
        x = x + y
    return jnp.maximum(x, 0.0)


if __name__ == "__main__":
    # Small, self-consistent shapes: residual add requires in_channels == num_hiddens.
    N = 4                       # batch (folded 2-per-grid-step; grid length stays 2)
    C = 32                      # in_channels == num_hiddens
    L = 16                      # sequence length
    H = 16                      # num_residual_hiddens
    NUM_LAYERS = 2              # num_residual_layers

    key = jax.random.PRNGKey(0)
    kx, k1, k2 = jax.random.split(key, 3)

    x = jax.random.normal(kx, (N, C, L), dtype=jnp.float32)
    # Deterministic synthetic weights (no checkpoint load).
    w1_all = 0.1 * jax.random.normal(k1, (NUM_LAYERS, 3, C, H), dtype=jnp.float32)
    w2_all = 0.1 * jax.random.normal(k2, (NUM_LAYERS, H, C), dtype=jnp.float32)

    out = jax.jit(residual_stack_pallas)(x, w1_all, w2_all)
    out = jax.block_until_ready(out)

    ref = residual_stack_reference(x, w1_all, w2_all)
    assert out.shape == (N, C, L)
    # Tolerance loosened vs pure-f32 because the MXU operands are bf16
    # (accumulation and the residual carry remain f32).
    assert jnp.allclose(out, ref, atol=5e-2, rtol=5e-2), "Pallas result != reference"

    print("KERNEL_OK")
</pallas_src>

<mosaic_0001>
module attributes {stable_mosaic.version = 11 : i64} {
  func.func @residual_stack_kernel(%arg0: i32, %arg1: memref<2x16x32xf32, #tpu.memory_space<vmem>>, %arg2: memref<2x3x32x16xbf16, #tpu.memory_space<vmem>>, %arg3: memref<2x16x32xbf16, #tpu.memory_space<vmem>>, %arg4: memref<2x16x32xf32, #tpu.memory_space<vmem>>) attributes {dimension_semantics = [#tpu.dimension_semantics<parallel>], iteration_bounds = array<i64: 2>, scalar_prefetch = 0 : i64, scratch_operands = 0 : i64, tpu.core_type = #tpu.core_type<tc>, window_params = [{transform_indices = @transform_0, window_bounds = array<i64: 2, 16, 32>}, {pipeline_mode = #tpu.pipeline_mode<synchronous>, transform_indices = @transform_1, window_bounds = array<i64: 2, 3, 32, 16>}, {pipeline_mode = #tpu.pipeline_mode<synchronous>, transform_indices = @transform_2, window_bounds = array<i64: 2, 16, 32>}, {transform_indices = @transform_3, window_bounds = array<i64: 2, 16, 32>}]} {
    %c0 = arith.constant 0 : index
    %c0_0 = arith.constant 0 : index
    %c0_1 = arith.constant 0 : index
    %0 = vector.load %arg1[%c0, %c0_0, %c0_1] : memref<2x16x32xf32, #tpu.memory_space<vmem>>, vector<2x16x32xf32>
    %1 = vector.shape_cast %0 : vector<2x16x32xf32> to vector<32x32xf32>
    %2 = tpu.iota {dimensions = array<i32: 0>} : vector<32x32xi32>
    %c16_i32 = arith.constant 16 : i32
    %c0_i32 = arith.constant 0 : i32
    %3 = arith.cmpi eq, %c16_i32, %c0_i32 : i32
    %c1_i32 = arith.constant 1 : i32
    %4 = arith.select %3, %c1_i32, %c16_i32 : i32
    %5 = vector.broadcast %4 : i32 to vector<32x32xi32>
    %6 = arith.remsi %2, %5 : vector<32x32xi32>
    %c0_i32_2 = arith.constant 0 : i32
    %7 = vector.broadcast %c0_i32_2 : i32 to vector<32x32xi32>
    %8 = arith.cmpi ne, %6, %7 : vector<32x32xi32>
    %c0_i32_3 = arith.constant 0 : i32
    %9 = vector.broadcast %c0_i32_3 : i32 to vector<32x32xi32>
    %10 = arith.cmpi slt, %6, %9 : vector<32x32xi32>
    %c0_i32_4 = arith.constant 0 : i32
    %11 = arith.cmpi slt, %4, %c0_i32_4 : i32
    %12 = vector.broadcast %11 : i1 to vector<32x32xi1>
    %13 = vector.broadcast %12 : vector<32x32xi1> to vector<32x32xi1>
    %14 = arith.xori %10, %13 : vector<32x32xi1>
    %15 = arith.andi %14, %8 : vector<32x32xi1>
    %16 = vector.broadcast %4 : i32 to vector<32x32xi32>
    %17 = arith.addi %6, %16 : vector<32x32xi32>
    %18 = arith.select %15, %17, %6 : vector<32x32xi1>, vector<32x32xi32>
    %c0_i32_5 = arith.constant 0 : i32
    %19 = vector.broadcast %c0_i32_5 : i32 to vector<32x32xi32>
    %20 = arith.cmpi eq, %18, %19 : vector<32x32xi32>
    %c15_i32 = arith.constant 15 : i32
    %21 = vector.broadcast %c15_i32 : i32 to vector<32x32xi32>
    %22 = arith.cmpi eq, %18, %21 : vector<32x32xi32>
    %cst = arith.constant 0.000000e+00 : f32
    %23 = vector.broadcast %cst : f32 to vector<32x32xf32>
    %24 = arith.maximumf %1, %23 : vector<32x32xf32>
    %c1_i32_6 = arith.constant 1 : i32
    %25 = tpu.dynamic_rotate %24 by %c1_i32_6 dim 0 : vector<32x32xf32>, i32 -> vector<32x32xf32>
    %cst_7 = arith.constant 0.000000e+00 : f32
    %26 = vector.broadcast %cst_7 : f32 to vector<32x32xf32>
    %27 = arith.select %20, %26, %25 : vector<32x32xi1>, vector<32x32xf32>
    %c31_i32 = arith.constant 31 : i32
    %28 = tpu.dynamic_rotate %24 by %c31_i32 dim 0 : vector<32x32xf32>, i32 -> vector<32x32xf32>
    %cst_8 = arith.constant 0.000000e+00 : f32
    %29 = vector.broadcast %cst_8 : f32 to vector<32x32xf32>
    %30 = arith.select %22, %29, %28 : vector<32x32xi1>, vector<32x32xf32>
    %31 = arith.truncf %24 : vector<32x32xf32> to vector<32x32xbf16>
    %32 = arith.truncf %27 : vector<32x32xf32> to vector<32x32xbf16>
    %33 = arith.truncf %30 : vector<32x32xf32> to vector<32x32xbf16>
    %c0_9 = arith.constant 0 : index
    %c0_10 = arith.constant 0 : index
    %c0_11 = arith.constant 0 : index
    %c0_12 = arith.constant 0 : index
    %34 = vector.load %arg2[%c0_9, %c0_10, %c0_11, %c0_12] : memref<2x3x32x16xbf16, #tpu.memory_space<vmem>>, vector<1x1x32x16xbf16>
    %35 = vector.shape_cast %34 : vector<1x1x32x16xbf16> to vector<32x16xbf16>
    %cst_13 = arith.constant dense<0.000000e+00> : vector<32x16xf32>
    %36 = tpu.matmul %32, %35, %cst_13 {dimension_numbers = #tpu.dot_dimension_numbers<[1], [0], [0], [1], [0, 0, 1, 1], [], []>} : vector<32x32xbf16>, vector<32x16xbf16>, vector<32x16xf32> -> vector<32x16xf32>
    %c0_14 = arith.constant 0 : index
    %c1 = arith.constant 1 : index
    %c0_15 = arith.constant 0 : index
    %c0_16 = arith.constant 0 : index
    %37 = vector.load %arg2[%c0_14, %c1, %c0_15, %c0_16] : memref<2x3x32x16xbf16, #tpu.memory_space<vmem>>, vector<1x1x32x16xbf16>
    %38 = vector.shape_cast %37 : vector<1x1x32x16xbf16> to vector<32x16xbf16>
    %cst_17 = arith.constant dense<0.000000e+00> : vector<32x16xf32>
    %39 = tpu.matmul %31, %38, %cst_17 {dimension_numbers = #tpu.dot_dimension_numbers<[1], [0], [0], [1], [0, 0, 1, 1], [], []>} : vector<32x32xbf16>, vector<32x16xbf16>, vector<32x16xf32> -> vector<32x16xf32>
    %40 = arith.addf %36, %39 : vector<32x16xf32>
    %c0_18 = arith.constant 0 : index
    %c2 = arith.constant 2 : index
    %c0_19 = arith.constant 0 : index
    %c0_20 = arith.constant 0 : index
    %41 = vector.load %arg2[%c0_18, %c2, %c0_19, %c0_20] : memref<2x3x32x16xbf16, #tpu.memory_space<vmem>>, vector<1x1x32x16xbf16>
    %42 = vector.shape_cast %41 : vector<1x1x32x16xbf16> to vector<32x16xbf16>
    %cst_21 = arith.constant dense<0.000000e+00> : vector<32x16xf32>
    %43 = tpu.matmul %33, %42, %cst_21 {dimension_numbers = #tpu.dot_dimension_numbers<[1], [0], [0], [1], [0, 0, 1, 1], [], []>} : vector<32x32xbf16>, vector<32x16xbf16>, vector<32x16xf32> -> vector<32x16xf32>
    %44 = arith.addf %40, %43 : vector<32x16xf32>
    %cst_22 = arith.constant 0.000000e+00 : f32
    %45 = vector.broadcast %cst_22 : f32 to vector<32x16xf32>
    %46 = arith.maximumf %44, %45 : vector<32x16xf32>
    %47 = arith.truncf %46 : vector<32x16xf32> to vector<32x16xbf16>
    %c0_23 = arith.constant 0 : index
    %c0_24 = arith.constant 0 : index
    %c0_25 = arith.constant 0 : index
    %48 = vector.load %arg3[%c0_23, %c0_24, %c0_25] : memref<2x16x32xbf16, #tpu.memory_space<vmem>>, vector<1x16x32xbf16>
    %49 = vector.shape_cast %48 : vector<1x16x32xbf16> to vector<16x32xbf16>
    %cst_26 = arith.constant dense<0.000000e+00> : vector<32x32xf32>
    %50 = tpu.matmul %47, %49, %cst_26 {dimension_numbers = #tpu.dot_dimension_numbers<[1], [0], [0], [1], [0, 0, 1, 1], [], []>} : vector<32x16xbf16>, vector<16x32xbf16>, vector<32x32xf32> -> vector<32x32xf32>
    %51 = arith.addf %1, %50 : vector<32x32xf32>
    %cst_27 = arith.constant 0.000000e+00 : f32
    %52 = vector.broadcast %cst_27 : f32 to vector<32x32xf32>
    %53 = arith.maximumf %51, %52 : vector<32x32xf32>
    %c1_i32_28 = arith.constant 1 : i32
    %54 = tpu.dynamic_rotate %53 by %c1_i32_28 dim 0 : vector<32x32xf32>, i32 -> vector<32x32xf32>
    %cst_29 = arith.constant 0.000000e+00 : f32
    %55 = vector.broadcast %cst_29 : f32 to vector<32x32xf32>
    %56 = arith.select %20, %55, %54 : vector<32x32xi1>, vector<32x32xf32>
    %c31_i32_30 = arith.constant 31 : i32
    %57 = tpu.dynamic_rotate %53 by %c31_i32_30 dim 0 : vector<32x32xf32>, i32 -> vector<32x32xf32>
    %cst_31 = arith.constant 0.000000e+00 : f32
    %58 = vector.broadcast %cst_31 : f32 to vector<32x32xf32>
    %59 = arith.select %22, %58, %57 : vector<32x32xi1>, vector<32x32xf32>
    %60 = arith.truncf %53 : vector<32x32xf32> to vector<32x32xbf16>
    %61 = arith.truncf %56 : vector<32x32xf32> to vector<32x32xbf16>
    %62 = arith.truncf %59 : vector<32x32xf32> to vector<32x32xbf16>
    %c1_32 = arith.constant 1 : index
    %c0_33 = arith.constant 0 : index
    %c0_34 = arith.constant 0 : index
    %c0_35 = arith.constant 0 : index
    %63 = vector.load %arg2[%c1_32, %c0_33, %c0_34, %c0_35] : memref<2x3x32x16xbf16, #tpu.memory_space<vmem>>, vector<1x1x32x16xbf16>
    %64 = vector.shape_cast %63 : vector<1x1x32x16xbf16> to vector<32x16xbf16>
    %cst_36 = arith.constant dense<0.000000e+00> : vector<32x16xf32>
    %65 = tpu.matmul %61, %64, %cst_36 {dimension_numbers = #tpu.dot_dimension_numbers<[1], [0], [0], [1], [0, 0, 1, 1], [], []>} : vector<32x32xbf16>, vector<32x16xbf16>, vector<32x16xf32> -> vector<32x16xf32>
    %c1_37 = arith.constant 1 : index
    %c1_38 = arith.constant 1 : index
    %c0_39 = arith.constant 0 : index
    %c0_40 = arith.constant 0 : index
    %66 = vector.load %arg2[%c1_37, %c1_38, %c0_39, %c0_40] : memref<2x3x32x16xbf16, #tpu.memory_space<vmem>>, vector<1x1x32x16xbf16>
    %67 = vector.shape_cast %66 : vector<1x1x32x16xbf16> to vector<32x16xbf16>
    %cst_41 = arith.constant dense<0.000000e+00> : vector<32x16xf32>
    %68 = tpu.matmul %60, %67, %cst_41 {dimension_numbers = #tpu.dot_dimension_numbers<[1], [0], [0], [1], [0, 0, 1, 1], [], []>} : vector<32x32xbf16>, vector<32x16xbf16>, vector<32x16xf32> -> vector<32x16xf32>
    %69 = arith.addf %65, %68 : vector<32x16xf32>
    %c1_42 = arith.constant 1 : index
    %c2_43 = arith.constant 2 : index
    %c0_44 = arith.constant 0 : index
    %c0_45 = arith.constant 0 : index
    %70 = vector.load %arg2[%c1_42, %c2_43, %c0_44, %c0_45] : memref<2x3x32x16xbf16, #tpu.memory_space<vmem>>, vector<1x1x32x16xbf16>
    %71 = vector.shape_cast %70 : vector<1x1x32x16xbf16> to vector<32x16xbf16>
    %cst_46 = arith.constant dense<0.000000e+00> : vector<32x16xf32>
    %72 = tpu.matmul %62, %71, %cst_46 {dimension_numbers = #tpu.dot_dimension_numbers<[1], [0], [0], [1], [0, 0, 1, 1], [], []>} : vector<32x32xbf16>, vector<32x16xbf16>, vector<32x16xf32> -> vector<32x16xf32>
    %73 = arith.addf %69, %72 : vector<32x16xf32>
    %cst_47 = arith.constant 0.000000e+00 : f32
    %74 = vector.broadcast %cst_47 : f32 to vector<32x16xf32>
    %75 = arith.maximumf %73, %74 : vector<32x16xf32>
    %76 = arith.truncf %75 : vector<32x16xf32> to vector<32x16xbf16>
    %c1_48 = arith.constant 1 : index
    %c0_49 = arith.constant 0 : index
    %c0_50 = arith.constant 0 : index
    %77 = vector.load %arg3[%c1_48, %c0_49, %c0_50] : memref<2x16x32xbf16, #tpu.memory_space<vmem>>, vector<1x16x32xbf16>
    %78 = vector.shape_cast %77 : vector<1x16x32xbf16> to vector<16x32xbf16>
    %cst_51 = arith.constant dense<0.000000e+00> : vector<32x32xf32>
    %79 = tpu.matmul %76, %78, %cst_51 {dimension_numbers = #tpu.dot_dimension_numbers<[1], [0], [0], [1], [0, 0, 1, 1], [], []>} : vector<32x16xbf16>, vector<16x32xbf16>, vector<32x32xf32> -> vector<32x32xf32>
    %80 = arith.addf %51, %79 : vector<32x32xf32>
    %cst_52 = arith.constant 0.000000e+00 : f32
    %81 = vector.broadcast %cst_52 : f32 to vector<32x32xf32>
    %82 = arith.maximumf %80, %81 : vector<32x32xf32>
    %83 = vector.shape_cast %82 : vector<32x32xf32> to vector<2x16x32xf32>
    %c0_53 = arith.constant 0 : index
    %c0_54 = arith.constant 0 : index
    %c0_55 = arith.constant 0 : index
    %84 = vector.load %arg4[%c0_53, %c0_54, %c0_55] : memref<2x16x32xf32, #tpu.memory_space<vmem>>, vector<2x16x32xf32>
    tpu.vector_store %arg4[%c0_53, %c0_54, %c0_55], %83 {strides = array<i32>} : memref<2x16x32xf32, #tpu.memory_space<vmem>>, vector<2x16x32xf32>,
    return
  }
  func.func @transform_0(%arg0: i32) -> (i32, i32, i32) {
    %c0_i32 = arith.constant 0 : i32
    %c0_i32_0 = arith.constant 0 : i32
    %c0_i32_1 = arith.constant 0 : i32
    return %arg0, %c0_i32, %c0_i32_0 : i32, i32, i32
  }
  func.func @transform_1(%arg0: i32) -> (i32, i32, i32, i32) {
    %c0_i32 = arith.constant 0 : i32
    %c0_i32_0 = arith.constant 0 : i32
    %c0_i32_1 = arith.constant 0 : i32
    %c0_i32_2 = arith.constant 0 : i32
    %c0_i32_3 = arith.constant 0 : i32
    return %c0_i32, %c0_i32_0, %c0_i32_1, %c0_i32_2 : i32, i32, i32, i32
  }
  func.func @transform_2(%arg0: i32) -> (i32, i32, i32) {
    %c0_i32 = arith.constant 0 : i32
    %c0_i32_0 = arith.constant 0 : i32
    %c0_i32_1 = arith.constant 0 : i32
    %c0_i32_2 = arith.constant 0 : i32
    return %c0_i32, %c0_i32_0, %c0_i32_1 : i32, i32, i32
  }
  func.func @transform_3(%arg0: i32) -> (i32, i32, i32) {
    %c0_i32 = arith.constant 0 : i32
    %c0_i32_0 = arith.constant 0 : i32
    %c0_i32_1 = arith.constant 0 : i32
    return %arg0, %c0_i32, %c0_i32_0 : i32, i32, i32
  }
}

</mosaic_0001>

<bundles_post_ra>
// kernel: residual_stack_pallas.1
= control target key start
LH: loop header
LB: loop body
LE: loop exit
PB: predicated region body
PF: predicated region fallthrough
CT: control target
= control target key end

     0   :  { %8 = vsyncpa [#allocation3], 0  ;;  %s1569_s0 = inlined_call_operand.vmem [shape: f32[4,16,32], index: 0, kind: input, shape index: {}]   ;;  %s1570_s1 = inlined_call_operand.vmem [shape: bf16[2,3,32,16], index: 1, kind: input, shape index: {}]   ;;  %s1571_s2 = inlined_call_operand.vmem [shape: bf16[2,16,32], index: 2, kind: input, shape index: {}]   ;;  %s1572_s3 = inlined_call_operand.hbm [shape: f32[4,16,32], index: 3, kind: output, shape index: {}]  }
   0x1   :  { %10 = vsyncpa [#allocation3 + $0x1], 0  ;;  %s1301_s12 = smov 0   ;;  %s1303_s13 = smov 0  }
   0x2   :  { %s1305_s14 = smov 0   ;;  %s1307_s15 = smov 0  }
   0x3 LB: > { %s1322_s16 = sadd.s32 4294967295, %s1276_s15   ;;  %s984_s17 = sadd.s32 4294967294, %s1276_s15   ;;  %s1276_s15 = sphi %s1307_s15, %s1586_s15   ;;  %s1272_s14 = sphi %s1305_s14, %s1585_s14   ;;  %s1268_s13 = sphi %s1303_s13, %s1584_s13   ;;  %s1264_s12 = sphi %s1301_s12, %s1583_s12  }
   0x4   : > { %s1326_s18 = sadd.s32 1, %s1276_s15   ;;  %s91_s19 = sadd.s32 1, %s1272_s14 }
   0x5   : > { %s88_s20 = ssub.s32 %s1276_s15, %s1326_s18  ;;  %p101_p0 = scmp.ne.s32.totalorder %s1272_s14, %s1268_s13 }
   0x6   : > { %p89_p1 = scmp.eq.s32.totalorder %s88_s20, 0  ;;  %p102_p2 = scmp.eq.s32.totalorder %s1322_s16, 1 }
   0x7   : > { %p107_p3 = scmp.ne.s32.totalorder %s1268_s13, %s1264_s12  ;;  %p108_p4 = scmp.eq.s32.totalorder %s984_s17, 1 }
   0x8   : > { %s1337_s21 = scalar_select %p89_p1, %s1272_s14, %s91_s19  }
   0x9   : > { %p1339_p5 = por %p102_p2, %p101_p0  ;;  %p1343_p6 = por %p108_p4, %p107_p3 }
   0xa   : > { %p987_p7 = scmp.ge.s32.totalorder %s1276_s15, 1  ;;  %p142_p8 = scmp.lt.s32.totalorder %s1276_s15, 3 }
   0xc   : > { %p143_p9 = pnand %p987_p7, %p142_p8 }
   0xd   : > { %v1200_v0 = vld [vmem:[%s1570_s1 + $0x10] sm:$0xff] (!%p143_p9)   ;;  %s989_s26 = sshll.u32 (!%p143_p9), %s1322_s16, 1  ;;  %v180_v1 = vlaneseq (!%p143_p9)  ;;  %v1201_v2 = vld [vmem:[%s1570_s1 + $0x18] sm:$0xff] (!%p143_p9)   ;;  %v1202_v3 = vld [vmem:[%s1570_s1] sm:$0xff] (!%p143_p9)   ;;  %vm298_vm0 = vcmask (!%p143_p9), 261120   ;;  %vm511_vm7 = vcmask (!%p143_p9), 130048  }
   0xe   : > { %146 = sbr.rel (%p143_p9) target bundleno = 974 (0x3ce), region = 32  ;;  %p168_p10 = scmp.lt.s32.totalorder (!%p143_p9), %s989_s26, 3  ;;  %1083 = vmatprep.subr.bf16.mxu0 (!%p143_p9), %v1200_v0  ;;  %v1203_v20 = vld [vmem:[%s1570_s1 + $0x8] sm:$0xff] (!%p143_p9)   ;;  %v1204_v31 = vld [vmem:[%s1570_s1 + $0x20] sm:$0xff] (!%p143_p9)  }
   0xf   : > { %1084 = vmatpush3.bf16.msra.mxu0 (!%p143_p9), %v1200_v0  ;;  %v1359_v4 = vshrl.u32 (!%p143_p9), %v180_v1, 7  ;;  %v1205_v46 = vld [vmem:[%s1570_s1 + $0x28] sm:$0xff] (!%p143_p9)   ;;  %v1206_v53 = vld [vmem:[%s1571_s2] sm:$0xff] (!%p143_p9)   ;;  %s164_s17 = sand.u32 (!%p143_p9), 1, %s1268_s13   ;;  %s1052_s25 = sshll.u32 (!%p143_p9), %s1322_s16, 9 }
  0x10   : > { %1085 = vmatprep.subr.bf16.mxu0 (!%p143_p9), %v1201_v2  ;;  %1107 = vmatprep.subr.bf16.mxu1 (!%p143_p9), %v1206_v53  ;;  %v1207_v0 = vld [vmem:[%s1570_s1 + $0x40] sm:$0xff] (!%p143_p9)   ;;  %v1208_v1 = vld [vmem:[%s1570_s1 + $0x48] sm:$0xff] (!%p143_p9)   ;;  %s988_s19 = sshll.u32 (!%p143_p9), %s164_s17, 5  ;;  %s1524_s28 = scalar_lea.hbm (!%p143_p9), %s1572_s3, %s1052_s25 }
  0x11   : > { %v189_v8 = vand.u32 (!%p143_p9), 15, %v1359_v4  ;;  %v183_v9 = vadd.s32 (!%p143_p9), 16, %v1359_v4  ;;  %v182_v14 = vadd.s32 (!%p143_p9), 8, %v1359_v4  ;;  %vm249_vm1 = vcmp.lt.s32.totalorder (!%p143_p9), %v1359_v4, 1  ;;  %1108 = vmatpush3.bf16.msra.mxu1 (!%p143_p9), %v1206_v53  ;;  %s166_s20 = scalar_lea.vmem (!%p143_p9), [#allocation2], %s988_s19  ;;  %s1528_s16 = scalar_lea.sflag (!%p143_p9), [#allocation3], %s164_s17 }
  0x12   : > { %vm262_vm3 = vcmp.lt.s32.totalorder (!%p143_p9), %v1359_v4, 7  ;;  %v184_v42 = vadd.s32 (!%p143_p9), 24, %v1359_v4  ;;  %1113 = vmatprep.subr.bf16.mxu1 (!%p143_p9), %v1207_v0  ;;  %s922_s24 = sshll.u32 (!%p143_p9), %s166_s20, 4  ;;  %s1278_s30 = smov (!%p143_p9), [#allocation2]   ;;  %s1518_s24 = int_to_ptr.vmem [resolvable:$true] %s922_s24 }
  0x13   : > { %1086 = vmatpush3.bf16.msra.mxu0 (!%p143_p9), %v1201_v2  ;;  %vm1383_vm2 = vcmp.eq.s32.totalorder (!%p143_p9), %v189_v8, 0  ;;  %v203_v24 = vand.u32 (!%p143_p9), 15, %v183_v9  ;;  %v196_v25 = vand.u32 (!%p143_p9), 15, %v182_v14  ;;  %v1209_v2 = vld [vmem:[%s1570_s1 + $0x30] sm:$0xff] (!%p143_p9)   ;;  %s1214_s29 = scalar_lea.vmem (!%p143_p9), %s1518_s24, 512 }
  0x14   : > { %1091 = vmatprep.subr.bf16.mxu0 (!%p143_p9), %v1202_v3  ;;  %v210_v47 = vand.u32 (!%p143_p9), 15, %v184_v42  ;;  %p1215_p11 = scmp.ne.s32.totalorder (!%p143_p9), %s1518_s24, %s1214_s29 }
  0x15   : > { %s1588_s26 = smov (!%p168_p10, %s989_s26), 3  ;;  %vm1399_vm4 = vcmp.eq.s32.totalorder %v203_v24, 0  ;;  %vm1405_vm5 = vcmp.eq.s32.totalorder %v196_v25, 15  ;;  %v1210_v24 = vld [vmem:[%s1570_s1 + $0x38] sm:$0xff]  }
  0x16   : > { %s1050_s4 = sshll.u32 %s1588_s26, 4  ;;  %vm1426_vm6 = vcmp.eq.s32.totalorder %v210_v47, 15  ;;  %p1216_p12 = pnand %p1215_p11, %p1339_p5 }
  0x17   : > { %s172_s7 = scalar_lea.vmem %s1569_s0, %s1050_s4  ;;  %s1218_s4 = sshll.u32 %s1278_s30, 4  ;;  %s1219_s4 = int_to_ptr.vmem [resolvable:$false] %s1218_s4 }
  0x18   : > { %v1364_v5 = vld [vmem:[%s172_s7] sm:$0xff]  ;;  %v1366_v6 = vld [vmem:[%s172_s7 + $0x8] sm:$0xff]  ;;  %v1368_v7 = vld [vmem:[%s172_s7 + $0x10] sm:$0xff]  ;;  %p1217_p13 = pneg %p1216_p12  ;;  %s1220_s5 = scalar_lea.vmem %s1219_s4, 1024 }
  0x19   : > { %v241_v10 = vmax.f32 %v1364_v5, 0.0  ;;  %v242_v11 = vmax.f32 %v1366_v6, 0.0  ;;  %v1374_v12 = vld [vmem:[%s172_s7 + $0x18] sm:$0xff]  ;;  %v243_v13 = vmax.f32 %v1368_v7, 0.0  ;;  %p1221_p0 = scmp.lt.s32.totalorder %s1518_s24, %s1219_s4  ;;  %p1222_p1 = scmp.lt.s32.totalorder %s1220_s5, %s1214_s29 }
  0x1a   : > { %v244_v15 = vmax.f32 %v1374_v12, 0.0 }
  0x1b   : > { %v245_v16 = vrot.slane %v241_v10, 7  ;;  %v246_v17 = vrot.slane %v242_v11, 7  ;;  %v271_v18 = vpack.c.bf16 %v242_v11, %v241_v10  ;;  %v247_v22 = vrot.slane %v243_v13, 7  ;;  %p1223_p2 = por %p1222_p1, %p1221_p0 }
  0x1c   : > { %v272_v19 = vpack.c.bf16 %v244_v15, %v243_v13  ;;  %v248_v23 = vrot.slane %v244_v15, 7  ;;  %v259_v26 = vrot.slane %v242_v11, 1  ;;  %v260_v28 = vrot.slane %v243_v13, 1 }
  0x1d   : > { %1087 = vmatprep.mubr.msk.bf16.mxu0 %vm298_vm0, %v271_v18  ;;  %v252_v27 = vsel %vm249_vm1, %v245_v16, %v246_v17  ;;  %v258_v32 = vrot.slane %v241_v10, 1  ;;  %v251_v35 = vsel %vm249_vm1, %v246_v17, %v247_v22  ;;  %v261_v45 = vrot.slane %v244_v15, 1  ;;  %p1224_p3 = pnand %p1223_p2, %p1217_p13 }
  0x1e   : > { %1088 = vmatmul.mubr.msk.bf16.vlgmr.msra.gmra.mrb[0].mxu0 %vm298_vm0, %v272_v19  ;;  %v253_v29 = vsel %vm249_vm1, %v248_v23, %v245_v16  ;;  %v264_v37 = vsel %vm262_vm3, %v259_v26, %v260_v28  ;;  %v250_v38 = vsel %vm249_vm1, %v247_v22, %v248_v23  ;;  %v256_v39 = vsel %vm1399_vm4, 0.0, %v251_v35 }
  0x1f   : > { %1092 = vmatpush3.bf16.msra.mxu0 %v1202_v3  ;;  %v254_v30 = vsel %vm1383_vm2, 0.0, %v253_v29  ;;  %v265_v40 = vsel %vm262_vm3, %v258_v32, %v259_v26  ;;  %v268_v41 = vsel %vm1405_vm5, 0.0, %v264_v37  ;;  %v274_v43 = vpack.c.bf16 %v250_v38, %v256_v39  ;;  %v1211_v29 = vld [vmem:[%s1570_s1 + $0x50] sm:$0xff]  }
  0x20   : > { %1093 = vmatprep.subr.bf16.mxu0 %v1203_v20  ;;  %v273_v33 = vpack.c.bf16 %v252_v27, %v254_v30  ;;  %v275_v44 = vpack.c.bf16 %v268_v41, %v265_v40  ;;  %v266_v49 = vsel %vm262_vm3, %v261_v45, %v258_v32  ;;  %v263_v50 = vsel %vm262_vm3, %v260_v28, %v261_v45  ;;  %v1212_v40 = vld [vmem:[%s1570_s1 + $0x58] sm:$0xff]   ;;  %v1213_v45 = vld [vmem:[%s1571_s2 + $0x8] sm:$0xff]  }
  0x21   : > { %v270_v51 = vsel %vm1426_vm6, 0.0, %v266_v49 }
  0x22   : > { %1095 = vmatprep.mubr.msk.bf16.mxu0 %vm298_vm0, %v273_v33  ;;  %v276_v52 = vpack.c.bf16 %v270_v51, %v263_v50 }
  0x23   : > { %1094 = vmatpush3.bf16.msra.mxu0 %v1203_v20 }
  0x24   : > { %1099 = vmatprep.subr.bf16.mxu0 %v1204_v31 }
  0x2a   : > { %1096 = vmatmul.mubr.msk.bf16.vlgmr.msra.gmra.mrb[0].mxu0 %vm298_vm0, %v274_v43 }
  0x2b   : > { %1100 = vmatpush3.bf16.msra.mxu0 %v1204_v31  ;;  %1103 = vmatprep.mubr.msk.bf16.mxu0 %vm298_vm0, %v275_v44 }
  0x2c   : > { %1101 = vmatprep.subr.bf16.mxu0 %v1205_v46 }
  0x2f   : > { %1102 = vmatpush3.bf16.msra.mxu0 %v1205_v46 }
  0x30   : > { %1137 = vmatprep.subr.bf16.mxu0 %v1213_v45 }
  0x36   : > { %1104 = vmatmul.mubr.msk.bf16.vlgmr.msra.gmra.mrb[0].mxu0 %vm298_vm0, %v276_v52 }
  0x37   : > { %1138 = vmatpush3.bf16.msra.mxu0 %v1213_v45 }
 0x109   : > { %v1105_v54 = vpop.f32.mrb[0].mxu0 }
 0x10a   : > { %v478_v55 = vpop.f32.mrb[1].mxu0  ;;  %v499_v57 = vmax.f32 %v1105_v54, 0.0 }
 0x10b   : > { %v1106_v56 = vpop.f32.mrb[2].mxu0  ;;  %v497_v60 = vmax.f32 %v478_v55, 0.0 }
 0x10c   : > { %v500_v58 = vmax.f32 %v1106_v56, 0.0  ;;  %v481_v59 = vpop.f32.mrb[3].mxu0 }
 0x10d   : > { %v498_v61 = vmax.f32 %v481_v59, 0.0 }
 0x10e   : > { %v502_v62 = vpack.c.bf16 %v500_v58, %v499_v57 }
 0x10f   : > { %v501_v63 = vpack.c.bf16 %v498_v61, %v497_v60 }
 0x111   : > { %1109 = vmatprep.mubr.msk.bf16.mxu1 %vm511_vm7, %v501_v63 }
 0x112   : > { %1110 = vmatmul.mubr.msk.bf16.vlgmr.msra.gmra.mrb[0].mxu1 %vm511_vm7, %v502_v62 }
 0x113   : > { %1114 = vmatpush3.bf16.msra.mxu1 %v1207_v0 }
 0x114   : > { %1115 = vmatprep.subr.bf16.mxu1 %v1208_v1 }
 0x117   : > { %1116 = vmatpush3.bf16.msra.mxu1 %v1208_v1 }
 0x118   : > { %1121 = vmatprep.subr.bf16.mxu1 %v1209_v2 }
 0x1e5   : > { %v1111_v3 = vpop.f32.mrb[0].mxu1 }
 0x1e6   : > { %v552_v8 = vpop.f32.mrb[1].mxu1  ;;  %v1455_v11 = vadd.f32 %v1111_v3, %v1368_v7 }
 0x1e7   : > { %v1452_v9 = vadd.f32 %v552_v8, %v1364_v5  ;;  %v1112_v10 = vpop.f32.mrb[2].mxu1 }
 0x1e8   : > { %v1458_v13 = vadd.f32 %v1112_v10, %v1374_v12  ;;  %v555_v14 = vpop.f32.mrb[3].mxu1  ;;  %v573_v5 = vmax.f32 %v1455_v11, 0.0 }
 0x1e9   : > { %v571_v15 = vmax.f32 %v1452_v9, 0.0  ;;  %v1462_v16 = vadd.f32 %v555_v14, %v1366_v6 }
 0x1ea   : > { %v574_v17 = vmax.f32 %v1458_v13, 0.0  ;;  %v577_v28 = vrot.slane %v573_v5, 7  ;;  %v589_v30 = vrot.slane %v573_v5, 1 }
 0x1eb   : > { %v575_v18 = vrot.slane %v571_v15, 7  ;;  %v572_v19 = vmax.f32 %v1462_v16, 0.0  ;;  %v587_v32 = vrot.slane %v571_v15, 1 }
 0x1ec   : > { %v578_v20 = vrot.slane %v574_v17, 7  ;;  %v600_v23 = vpack.c.bf16 %v574_v17, %v573_v5  ;;  %v590_v42 = vrot.slane %v574_v17, 1 }
 0x1ed   : > { %v576_v22 = vrot.slane %v572_v19, 7  ;;  %v599_v7 = vpack.c.bf16 %v572_v19, %v571_v15  ;;  %v588_v27 = vrot.slane %v572_v19, 1 }
 0x1ee   : > { %v582_v12 = vsel %vm249_vm1, %v578_v20, %v575_v18  ;;  %v579_v38 = vsel %vm249_vm1, %v577_v28, %v578_v20  ;;  %v594_v34 = vsel %vm262_vm3, %v590_v42, %v587_v32  ;;  %v591_v36 = vsel %vm262_vm3, %v589_v30, %v590_v42 }
 0x1ef   : > { %1117 = vmatprep.mubr.msk.bf16.mxu1 %vm298_vm0, %v599_v7  ;;  %v581_v6 = vsel %vm249_vm1, %v575_v18, %v576_v22  ;;  %v583_v25 = vsel %vm1383_vm2, 0.0, %v582_v12  ;;  %v580_v31 = vsel %vm249_vm1, %v576_v22, %v577_v28  ;;  %v592_v21 = vsel %vm262_vm3, %v588_v27, %v589_v30 }
 0x1f0   : > { %1118 = vmatmul.mubr.msk.bf16.vlgmr.msra.gmra.mrb[4].mxu1 %vm298_vm0, %v600_v23  ;;  %v601_v26 = vpack.c.bf16 %v581_v6, %v583_v25  ;;  %v585_v33 = vsel %vm1399_vm4, 0.0, %v580_v31  ;;  %v593_v35 = vsel %vm262_vm3, %v587_v32, %v588_v27  ;;  %v596_v37 = vsel %vm1405_vm5, 0.0, %v592_v21 }
 0x1f1   : > { %1122 = vmatpush3.bf16.msra.mxu1 %v1209_v2  ;;  %v602_v39 = vpack.c.bf16 %v579_v38, %v585_v33  ;;  %v603_v41 = vpack.c.bf16 %v596_v37, %v593_v35  ;;  %v598_v43 = vsel %vm1426_vm6, 0.0, %v594_v34 }
 0x1f2   : > { %1125 = vmatprep.mubr.msk.bf16.mxu1 %vm298_vm0, %v601_v26  ;;  %1123 = vmatprep.subr.bf16.mxu1 %v1210_v24  ;;  %v604_v44 = vpack.c.bf16 %v598_v43, %v591_v36 }
 0x1f5   : > { %1124 = vmatpush3.bf16.msra.mxu1 %v1210_v24 }
 0x1f6   : > { %1129 = vmatprep.subr.bf16.mxu1 %v1211_v29 }
 0x1fc   : > { %1126 = vmatmul.mubr.msk.bf16.vlgmr.msra.gmra.mrb[4].mxu1 %vm298_vm0, %v602_v39 }
 0x1fd   : > { %1130 = vmatpush3.bf16.msra.mxu1 %v1211_v29  ;;  %1133 = vmatprep.mubr.msk.bf16.mxu1 %vm298_vm0, %v603_v41 }
 0x1fe   : > { %1131 = vmatprep.subr.bf16.mxu1 %v1212_v40 }
 0x201   : > { %1132 = vmatpush3.bf16.msra.mxu1 %v1212_v40 }
 0x208   : > { %1134 = vmatmul.mubr.msk.bf16.vlgmr.msra.gmra.mrb[4].mxu1 %vm298_vm0, %v604_v44 }
 0x2db   : > { %v1135_v46 = vpop.f32.mrb[4].mxu1 }
 0x2dc   : > { %v806_v47 = vpop.f32.mrb[5].mxu1  ;;  %v827_v50 = vmax.f32 %v1135_v46, 0.0 }
 0x2dd   : > { %v1136_v49 = vpop.f32.mrb[6].mxu1  ;;  %v825_v52 = vmax.f32 %v806_v47, 0.0 }
 0x2de   : > { %v828_v51 = vmax.f32 %v1136_v49, 0.0  ;;  %v809_v4 = vpop.f32.mrb[7].mxu1 }
 0x2df   : > { %v826_v53 = vmax.f32 %v809_v4, 0.0 }
 0x2e0   : > { %v830_v48 = vpack.c.bf16 %v828_v51, %v827_v50 }
 0x2e1   : > { %v829_v54 = vpack.c.bf16 %v826_v53, %v825_v52 }
 0x2e3   : > { %1139 = vmatprep.mubr.msk.bf16.mxu0 %vm511_vm7, %v829_v54 }
 0x2e4   : > { %1140 = vmatmul.mubr.msk.bf16.vlgmr.msra.gmra.mrb[4].mxu0 %vm511_vm7, %v830_v48 }
 0x3b7   : > { %v1141_v55 = vpop.f32.mrb[4].mxu0 }
 0x3b8   : > { %v897_v56 = vadd.f32 %v1141_v55, %v1455_v11  ;;  %v880_v57 = vpop.f32.mrb[5].mxu0 }
 0x3b9   : > { %v895_v58 = vadd.f32 %v880_v57, %v1452_v9  ;;  %v1142_v59 = vpop.f32.mrb[6].mxu0 }
 0x3ba   : > { %v901_v60 = vmax.f32 %v897_v56, 0.0  ;;  %v898_v61 = vadd.f32 %v1142_v59, %v1458_v13  ;;  %v883_v62 = vpop.f32.mrb[7].mxu0 }
 0x3bb   : > { %v899_v63 = vmax.f32 %v895_v58, 0.0  ;;  %v896_v0 = vadd.f32 %v883_v62, %v1462_v16 }
 0x3bc   : > { %905 = vst.msk [vmem:[%s166_s20 + $0x10] sm:$0xff] %vm298_vm0, %v901_v60  ;;  %v902_v1 = vmax.f32 %v898_v61, 0.0 }
 0x3bd   : > { %903 = vst.msk [vmem:[%s166_s20] sm:$0xff] %vm298_vm0, %v899_v63  ;;  %v900_v2 = vmax.f32 %v896_v0, 0.0 }
 0x3be   : > { %906 = vst.msk [vmem:[%s166_s20 + $0x18] sm:$0xff] %vm298_vm0, %v902_v1 }
 0x3bf   : > { %904 = vst.msk [vmem:[%s166_s20 + $0x8] sm:$0xff] %vm298_vm0, %v900_v2 }
 0x3c0   : > { %1227 = shalt.err (!%p1224_p3)
}
 0x3c1   : > { %s1228_s6 = scalar_lea.hbm %s1524_s28, 512  ;;  %s1232_s9 = scalar_lea.hbm %s1572_s3, 1024 }
 0x3c2   : > { %p1229_p4 = scmp.ne.s32.totalorder %s1524_s28, %s1228_s6  ;;  %p1233_p9 = scmp.lt.u32.totalorder %s1524_s28, %s1572_s3 }
 0x3c3   : > { %p1234_p10 = scmp.lt.u32.totalorder %s1232_s9, %s1228_s6  ;;  %p1236_p12 = scmp.lt.u32.totalorder %s1228_s6, %s1524_s28 }
 0x3c4   : > { %p1230_p7 = pnand %p1229_p4, %p1339_p5 }
 0x3c5   : > { %p1235_p11 = por %p1234_p10, %p1233_p9 }
 0x3c6   : > { %p1231_p8 = pneg %p1230_p7 }
 0x3c7   : > { %p1237_p13 = por %p1236_p12, %p1235_p11 }
 0x3c9   : > { %p1238_p0 = pnand %p1237_p13, %p1231_p8 }
 0x3cb   : > { %1241 = shalt.err (!%p1238_p0)
}
 0x3cc   : > { %s1279_s17 = smov 128   ;;  %s1280_s19 = smov 8  }
 0x3cd   : > { %1159 = dma.vmem_to_hbm [thread:$0]  (%p1339_p5), %s1518_s24, 512, %s1524_s28, %s1528_s16, %s1279_s17, %s1279_s17, %s1280_s19  }
 0x3ce PF: > { %p1165_p1 = scmp.ge.s32.totalorder %s1276_s15, 2  ;;  %s937_s20 = sand.u32 1, %s1264_s12  }
 0x3cf   : > { %s938_s25 = scalar_lea.sflag [#allocation3], %s937_s20 }
 0x3d0   : > { %p1162_p2 = pnand %p1165_p1, %p1343_p6 }
 0x3d2   : > { %1259 = dma.done.wait (!%p1162_p2), %s938_s25, 512  }
 0x3d3   : > { %1261 = vsyncadd (!%p1162_p2), %s938_s25, 4294966784  ;;  %p13_p3 = scmp.ge.s32.totalorder %s1326_s18, 4   ;;  %s1583_s12 = smov %s1268_s13 }
 0x3d4   : > { %s1584_s13 = smov %s1272_s14  ;;  %s1585_s14 = smov %s1337_s21 }
 0x3d5   : > { %s1586_s15 = smov %s1326_s18  ;;  %15 = sbr.rel (!%p13_p3) target bundleno = 3 (0x3), region = 73 }
 0x3dc   :  { %943 = vsyncpa [#allocation3], 1 }
 0x3dd   :  { %945 = vsyncpa [#allocation3 + $0x1], 1 }

</bundles_post_ra>
